<compile_context>
chip_gen: v7x
topology: tpu7x:2x2x1
jax: 0.10.0
libtpu: 0.0.40
codegen_flags: <defaults>
</compile_context>

<pallas_src>
import functools
import math

import jax
import jax.numpy as jnp
from jax.experimental import pallas as pl
from jax.experimental.pallas import tpu as pltpu


def _gelu_tanh(h):
    # GELU with tanh approximation, matching nn.GELU(approximate='tanh').
    c = math.sqrt(2.0 / math.pi)
    return 0.5 * h * (1.0 + jnp.tanh(c * (h + 0.044715 * (h * h * h))))


def _ffn_kernel(x_ref, w1_ref, b1_ref, w2_ref, b2_ref, o_ref, acc_ref,
                *, th, slice_weights, gelu_dtype):
    k = pl.program_id(1)

    @pl.when(k == 0)
    def _():
        acc_ref[...] = jnp.zeros_like(acc_ref)

    if slice_weights:
        # Weights are fully VMEM-resident; slice the k-th hidden chunk.
        # th is a multiple of 128 on this path, so the lane-dim slice is aligned.
        start = pl.multiple_of(k * th, 128)
        w1_blk = w1_ref[:, pl.ds(start, th)]
        b1_blk = b1_ref[:, pl.ds(start, th)]
        w2_blk = w2_ref[pl.ds(start, th), :]
    else:
        # BlockSpec already delivered the k-th hidden chunk (or the full weight).
        w1_blk = w1_ref[...]
        b1_blk = b1_ref[...]
        w2_blk = w2_ref[...]

    # linear1 chunk: [TM, d_model] @ [d_model, TH], f32 accumulation on MXU.
    h = jnp.dot(x_ref[...], w1_blk, preferred_element_type=jnp.float32)
    h = h + b1_blk.astype(jnp.float32)

    # GELU (tanh approximation); bf16 on bf16 inputs (native VPU/EUP), else f32.
    g = _gelu_tanh(h.astype(gelu_dtype))

    # linear2 chunk: [TM, TH] @ [TH, d_model], accumulated in f32 scratch.
    acc_ref[...] += jnp.dot(g.astype(w2_blk.dtype), w2_blk,
                            preferred_element_type=jnp.float32)

    @pl.when(k == pl.num_programs(1) - 1)
    def _():
        o_ref[...] = (acc_ref[...]
                      + b2_ref[...].astype(jnp.float32)).astype(o_ref.dtype)


def _round_up(x, m):
    return -(-x // m) * m


def _vmem_capacity_bytes():
    try:
        info = pltpu.get_tpu_info()
        cap = getattr(info, "vmem_capacity_bytes", None)
        if cap:
            return int(cap)
    except Exception:
        pass
    return 64 * 1024 * 1024  # conservative: v7x per-TensorCore VMEM


def _pick_hidden_tile(d_hidden, target, align=128):
    """Largest multiple of `align` that divides d_hidden and is <= target."""
    if d_hidden <= target or d_hidden % align != 0:
        return d_hidden
    t = (target // align) * align
    while t >= align:
        if d_hidden % t == 0:
            return t
        t -= align
    return d_hidden


def _th_candidates(d_hidden, target):
    if d_hidden % 128 != 0:
        return [d_hidden]
    top = _pick_hidden_tile(d_hidden, target)
    cands = [top]
    for t in (512, 256, 128):
        if t < top and d_hidden % t == 0:
            cands.append(t)
    return cands


def _tm_candidates(m_sub, target, sub):
    """Descending row-tile candidates (MXU 256-aligned when >=256)."""
    target = max(sub, _round_up(target, sub))
    cap = _round_up(m_sub, 256) if m_sub > 256 else m_sub
    top = min(target if target <= 256 else _round_up(target, 256), cap)
    top = max(sub, top)
    cands = []
    t = top
    while t >= sub:
        tt = t
        if tt > 256:
            tt = (tt // 256) * 256        # MXU-friendly
        tt = max(sub, (tt // sub) * sub)  # sublane-packing friendly
        if tt not in cands:
            cands.append(tt)
        if t == sub:
            break
        t = max(sub, t // 2)
    return cands


def feed_forward(x, w1, b1, w2, b2, *, tm_target=1024, th_target=512,
                 allow_resident_weights=True):
    """x: [batch, seq, d_model]; w1: [d_model, d_hidden]; b1: [d_hidden];
       w2: [d_hidden, d_model]; b2: [d_model]."""
    B, S, d_model = x.shape
    d_hidden = w1.shape[1]
    M = B * S
    x2d = x.reshape(M, d_model)

    x_i = x.dtype.itemsize
    w_i = w1.dtype.itemsize
    o_i = x.dtype.itemsize

    sub = {4: 8, 2: 16, 1: 32}.get(x_i, 8)
    M_sub = _round_up(M, sub)

    capacity = _vmem_capacity_bytes()
    usable = capacity - max(8 * 1024 * 1024, capacity // 8)

    tm_cands = _tm_candidates(M_sub, tm_target, sub)
    th_cands = _th_candidates(d_hidden, th_target)

    def usage(tm, th, resident):
        acts = 2 * tm * d_model * (x_i + o_i)      # x/out, double-buffered
        acc = tm * d_model * 4                     # f32 accumulator scratch
        inter = tm * th * (4 + 4 + w_i)            # h(f32) + gelu(h) + cast
        if resident:
            wts = 2 * w_i * (2 * d_model * d_hidden + d_hidden)
        else:
            wts = 2 * w_i * (2 * d_model * th + th)
        misc = 2 * d_model * w_i + (2 << 20)       # b2 + compiler slack
        return acts + acc + inter + wts + misc

    TM = TH = None
    resident = False
    if allow_resident_weights:
        for tm in tm_cands:
            for th in th_cands:
                if usage(tm, th, True) <= usable:
                    TM, TH, resident = tm, th, True
                    break
            if resident:
                break
    if TM is None:
        for tm in tm_cands:
            for th in th_cands:
                if usage(tm, th, False) <= usable:
                    TM, TH = tm, th
                    break
            if TM is not None:
                break
    if TM is None:  # last resort: smallest tiles, streamed weights
        TM, TH, resident = tm_cands[-1], th_cands[-1], False

    # v7x megacore: with resident weights, splitting rows is free (no extra
    # weight DMA) -- make sure the "parallel" axis has at least 2 tiles.
    if resident and _round_up(M_sub, TM) // TM < 2 and TM >= 512:
        TM = max(256, (TM // 2 // 256) * 256)

    M_pad = _round_up(M_sub, TM)
    if M_pad != M:
        x2d = jnp.pad(x2d, ((0, M_pad - M), (0, 0)))

    n_row = M_pad // TM
    n_k = d_hidden // TH
    grid = (n_row, n_k)

    b1_2d = b1.reshape(1, d_hidden)
    b2_2d = b2.reshape(1, d_model)

    gelu_dtype = jnp.bfloat16 if x.dtype == jnp.bfloat16 else jnp.float32

    if resident:
        # Full weights stay in VMEM; fetched from HBM exactly once.
        w1_spec = pl.BlockSpec((d_model, d_hidden), lambda i, k: (0, 0))
        b1_spec = pl.BlockSpec((1, d_hidden), lambda i, k: (0, 0))
        w2_spec = pl.BlockSpec((d_hidden, d_model), lambda i, k: (0, 0))
        weight_reads = 1
    else:
        # Weight chunks streamed per hidden step (re-read once per row tile).
        w1_spec = pl.BlockSpec((d_model, TH), lambda i, k: (0, k))
        b1_spec = pl.BlockSpec((1, TH), lambda i, k: (0, k))
        w2_spec = pl.BlockSpec((TH, d_model), lambda i, k: (k, 0))
        weight_reads = n_row

    cost = pl.CostEstimate(
        flops=4 * M_pad * d_model * d_hidden,
        transcendentals=M_pad * d_hidden,
        bytes_accessed=(M_pad * d_model * (x_i + o_i)
                        + weight_reads * w_i * (2 * d_model * d_hidden + d_hidden)
                        + d_model * w_i),
    )

    kernel = functools.partial(
        _ffn_kernel,
        th=TH,
        slice_weights=(resident and n_k > 1),
        gelu_dtype=gelu_dtype,
    )

    out = pl.pallas_call(
        kernel,
        out_shape=jax.ShapeDtypeStruct((M_pad, d_model), x.dtype),
        grid_spec=pltpu.PrefetchScalarGridSpec(
            num_scalar_prefetch=0,
            grid=grid,
            in_specs=[
                pl.BlockSpec((TM, d_model), lambda i, k: (i, 0)),   # x
                w1_spec,                                            # w1
                b1_spec,                                            # b1
                w2_spec,                                            # w2
                pl.BlockSpec((1, d_model), lambda i, k: (0, 0)),    # b2
            ],
            out_specs=pl.BlockSpec((TM, d_model), lambda i, k: (i, 0)),
            scratch_shapes=[pltpu.VMEM((TM, d_model), jnp.float32)],
        ),
        compiler_params=pltpu.CompilerParams(
            dimension_semantics=("parallel", "arbitrary"),
            vmem_limit_bytes=int(usable),
        ),
        cost_estimate=cost,
    )(x2d, w1, b1_2d, w2, b2_2d)

    return out[:M].reshape(B, S, d_model)


def feed_forward_ref(x, w1, b1, w2, b2):
    h = jnp.einsum("bsd,dh->bsh", x, w1) + b1
    g = _gelu_tanh(h)
    return jnp.einsum("bsh,hd->bsd", g, w2) + b2


if __name__ == "__main__":
    # Small config: batch=2, seq=8, d_model=32, d_hidden=64.
    batch, seq, d_model, d_hidden = 2, 8, 32, 64

    key = jax.random.PRNGKey(0)
    kx, kw1, kb1, kw2, kb2 = jax.random.split(key, 5)

    x = jax.random.normal(kx, (batch, seq, d_model), dtype=jnp.float32)
    # weights['w1'] is [d_model, d_hidden] (module transposes it for nn.Linear)
    w1 = jax.random.normal(kw1, (d_model, d_hidden), dtype=jnp.float32) * 0.1
    b1 = jax.random.normal(kb1, (d_hidden,), dtype=jnp.float32) * 0.1
    w2 = jax.random.normal(kw2, (d_hidden, d_model), dtype=jnp.float32) * 0.1
    b2 = jax.random.normal(kb2, (d_model,), dtype=jnp.float32) * 0.1

    out = jax.block_until_ready(feed_forward(x, w1, b1, w2, b2))
    ref = feed_forward_ref(x, w1, b1, w2, b2)
    assert out.shape == (batch, seq, d_model)
    assert jnp.allclose(out, ref, atol=1e-5, rtol=1e-5), "mismatch vs reference"

    # Exercise the resident-weight path with multiple hidden chunks
    # (in-kernel pl.ds slicing of the VMEM-resident weights).
    d_hidden2 = 256
    kw1b, kb1b, kw2b = jax.random.split(kw2, 3)
    w1b = jax.random.normal(kw1b, (d_model, d_hidden2), dtype=jnp.float32) * 0.1
    b1b = jax.random.normal(kb1b, (d_hidden2,), dtype=jnp.float32) * 0.1
    w2b = jax.random.normal(kw2b, (d_hidden2, d_model), dtype=jnp.float32) * 0.1

    out2 = jax.block_until_ready(feed_forward(x, w1b, b1b, w2b, b2, th_target=128))
    ref2 = feed_forward_ref(x, w1b, b1b, w2b, b2)
    assert jnp.allclose(out2, ref2, atol=1e-5, rtol=1e-5), "resident-path mismatch"

    # Exercise the streaming fallback (weight chunks per k-step) with
    # multiple row tiles and the f32 accumulator across hidden chunks.
    out3 = jax.block_until_ready(
        feed_forward(x, w1b, b1b, w2b, b2, tm_target=8, th_target=128,
                     allow_resident_weights=False))
    assert jnp.allclose(out3, ref2, atol=1e-5, rtol=1e-5), "streaming-path mismatch"

    print("KERNEL_OK")
</pallas_src>

<mosaic_0001>
module attributes {stable_mosaic.version = 11 : i64} {
  func.func @_ffn_kernel(%arg0: i32, %arg1: i32, %arg2: memref<16x32xf32, #tpu.memory_space<vmem>>, %arg3: memref<32x64xf32, #tpu.memory_space<vmem>>, %arg4: memref<1x64xf32, #tpu.memory_space<vmem>>, %arg5: memref<64x32xf32, #tpu.memory_space<vmem>>, %arg6: memref<1x32xf32, #tpu.memory_space<vmem>>, %arg7: memref<16x32xf32, #tpu.memory_space<vmem>>, %arg8: memref<16x32xf32, #tpu.memory_space<vmem>>) attributes {dimension_semantics = [#tpu.dimension_semantics<parallel>, #tpu.dimension_semantics<arbitrary>], iteration_bounds = array<i64: 1, 1>, scalar_prefetch = 0 : i64, scratch_operands = 1 : i64, tpu.core_type = #tpu.core_type<tc>, window_params = [{transform_indices = @transform_0, window_bounds = array<i64: 16, 32>}, {pipeline_mode = #tpu.pipeline_mode<synchronous>, transform_indices = @transform_1, window_bounds = array<i64: 32, 64>}, {pipeline_mode = #tpu.pipeline_mode<synchronous>, transform_indices = @transform_2, window_bounds = array<i64: 1, 64>}, {pipeline_mode = #tpu.pipeline_mode<synchronous>, transform_indices = @transform_3, window_bounds = array<i64: 64, 32>}, {pipeline_mode = #tpu.pipeline_mode<synchronous>, transform_indices = @transform_4, window_bounds = array<i64: 1, 32>}, {transform_indices = @transform_5, window_bounds = array<i64: 16, 32>}]} {
    %c0_i32 = arith.constant 0 : i32
    %0 = arith.cmpi eq, %arg1, %c0_i32 : i32
    %1 = arith.extui %0 : i1 to i32
    %c0_i32_0 = arith.constant 0 : i32
    %2 = arith.cmpi ne, %1, %c0_i32_0 : i32
    scf.if %2 {
      %cst_19 = arith.constant 0.000000e+00 : f32
      %30 = vector.broadcast %cst_19 : f32 to vector<16x32xf32>
      %c0_20 = arith.constant 0 : index
      %c0_21 = arith.constant 0 : index
      %31 = vector.load %arg8[%c0_20, %c0_21] : memref<16x32xf32, #tpu.memory_space<vmem>>, vector<16x32xf32>
      tpu.vector_store %arg8[%c0_20, %c0_21], %30 {strides = array<i32>} : memref<16x32xf32, #tpu.memory_space<vmem>>, vector<16x32xf32>,
    } else {
    }
    %c0 = arith.constant 0 : index
    %c0_1 = arith.constant 0 : index
    %3 = vector.load %arg3[%c0, %c0_1] : memref<32x64xf32, #tpu.memory_space<vmem>>, vector<32x64xf32>
    %c0_2 = arith.constant 0 : index
    %c0_3 = arith.constant 0 : index
    %4 = vector.load %arg4[%c0_2, %c0_3] : memref<1x64xf32, #tpu.memory_space<vmem>>, vector<1x64xf32>
    %c0_4 = arith.constant 0 : index
    %c0_5 = arith.constant 0 : index
    %5 = vector.load %arg5[%c0_4, %c0_5] : memref<64x32xf32, #tpu.memory_space<vmem>>, vector<64x32xf32>
    %c0_6 = arith.constant 0 : index
    %c0_7 = arith.constant 0 : index
    %6 = vector.load %arg2[%c0_6, %c0_7] : memref<16x32xf32, #tpu.memory_space<vmem>>, vector<16x32xf32>
    %cst = arith.constant dense<0.000000e+00> : vector<16x64xf32>
    %7 = tpu.matmul %6, %3, %cst {dimension_numbers = #tpu.dot_dimension_numbers<[1], [0], [0], [1], [0, 0, 1, 1], [], []>} : vector<16x32xf32>, vector<32x64xf32>, vector<16x64xf32> -> vector<16x64xf32>
    %8 = vector.broadcast %4 : vector<1x64xf32> to vector<16x64xf32>
    %9 = arith.addf %7, %8 : vector<16x64xf32>
    %cst_8 = arith.constant 5.000000e-01 : f32
    %10 = vector.broadcast %cst_8 : f32 to vector<16x64xf32>
    %11 = arith.mulf %10, %9 : vector<16x64xf32>
    %12 = arith.mulf %9, %9 : vector<16x64xf32>
    %13 = arith.mulf %12, %9 : vector<16x64xf32>
    %cst_9 = arith.constant 4.471500e-02 : f32
    %14 = vector.broadcast %cst_9 : f32 to vector<16x64xf32>
    %15 = arith.mulf %14, %13 : vector<16x64xf32>
    %16 = arith.addf %9, %15 : vector<16x64xf32>
    %cst_10 = arith.constant 0.797884583 : f32
    %17 = vector.broadcast %cst_10 : f32 to vector<16x64xf32>
    %18 = arith.mulf %17, %16 : vector<16x64xf32>
    %19 = math.tanh %18 : vector<16x64xf32>
    %cst_11 = arith.constant 1.000000e+00 : f32
    %20 = vector.broadcast %cst_11 : f32 to vector<16x64xf32>
    %21 = arith.addf %20, %19 : vector<16x64xf32>
    %22 = arith.mulf %11, %21 : vector<16x64xf32>
    %c0_12 = arith.constant 0 : index
    %c0_13 = arith.constant 0 : index
    %23 = vector.load %arg8[%c0_12, %c0_13] : memref<16x32xf32, #tpu.memory_space<vmem>>, vector<16x32xf32>
    %cst_14 = arith.constant dense<0.000000e+00> : vector<16x32xf32>
    %24 = tpu.matmul %22, %5, %cst_14 {dimension_numbers = #tpu.dot_dimension_numbers<[1], [0], [0], [1], [0, 0, 1, 1], [], []>} : vector<16x64xf32>, vector<64x32xf32>, vector<16x32xf32> -> vector<16x32xf32>
    %25 = arith.addf %23, %24 : vector<16x32xf32>
    %c0_15 = arith.constant 0 : index
    %c0_16 = arith.constant 0 : index
    %26 = vector.load %arg8[%c0_15, %c0_16] : memref<16x32xf32, #tpu.memory_space<vmem>>, vector<16x32xf32>
    tpu.vector_store %arg8[%c0_15, %c0_16], %25 {strides = array<i32>} : memref<16x32xf32, #tpu.memory_space<vmem>>, vector<16x32xf32>,
    %c0_i32_17 = arith.constant 0 : i32
    %27 = arith.cmpi eq, %arg1, %c0_i32_17 : i32
    %28 = arith.extui %27 : i1 to i32
    %c0_i32_18 = arith.constant 0 : i32
    %29 = arith.cmpi ne, %28, %c0_i32_18 : i32
    scf.if %29 {
      %c0_19 = arith.constant 0 : index
      %c0_20 = arith.constant 0 : index
      %30 = vector.load %arg8[%c0_19, %c0_20] : memref<16x32xf32, #tpu.memory_space<vmem>>, vector<16x32xf32>
      %c0_21 = arith.constant 0 : index
      %c0_22 = arith.constant 0 : index
      %31 = vector.load %arg6[%c0_21, %c0_22] : memref<1x32xf32, #tpu.memory_space<vmem>>, vector<1x32xf32>
      %32 = vector.broadcast %31 : vector<1x32xf32> to vector<16x32xf32>
      %33 = arith.addf %30, %32 : vector<16x32xf32>
      %c0_23 = arith.constant 0 : index
      %c0_24 = arith.constant 0 : index
      %34 = vector.load %arg7[%c0_23, %c0_24] : memref<16x32xf32, #tpu.memory_space<vmem>>, vector<16x32xf32>
      tpu.vector_store %arg7[%c0_23, %c0_24], %33 {strides = array<i32>} : memref<16x32xf32, #tpu.memory_space<vmem>>, vector<16x32xf32>,
    } else {
    }
    return
  }
  func.func @transform_0(%arg0: i32, %arg1: i32) -> (i32, i32) {
    %c0_i32 = arith.constant 0 : i32
    %c0_i32_0 = arith.constant 0 : i32
    return %arg0, %c0_i32 : i32, i32
  }
  func.func @transform_1(%arg0: i32, %arg1: i32) -> (i32, i32) {
    %c0_i32 = arith.constant 0 : i32
    %c0_i32_0 = arith.constant 0 : i32
    %c0_i32_1 = arith.constant 0 : i32
    return %c0_i32, %c0_i32_0 : i32, i32
  }
  func.func @transform_2(%arg0: i32, %arg1: i32) -> (i32, i32) {
    %c0_i32 = arith.constant 0 : i32
    %c0_i32_0 = arith.constant 0 : i32
    %c0_i32_1 = arith.constant 0 : i32
    return %c0_i32, %c0_i32_0 : i32, i32
  }
  func.func @transform_3(%arg0: i32, %arg1: i32) -> (i32, i32) {
    %c0_i32 = arith.constant 0 : i32
    %c0_i32_0 = arith.constant 0 : i32
    %c0_i32_1 = arith.constant 0 : i32
    return %c0_i32, %c0_i32_0 : i32, i32
  }
  func.func @transform_4(%arg0: i32, %arg1: i32) -> (i32, i32) {
    %c0_i32 = arith.constant 0 : i32
    %c0_i32_0 = arith.constant 0 : i32
    %c0_i32_1 = arith.constant 0 : i32
    return %c0_i32, %c0_i32_0 : i32, i32
  }
  func.func @transform_5(%arg0: i32, %arg1: i32) -> (i32, i32) {
    %c0_i32 = arith.constant 0 : i32
    %c0_i32_0 = arith.constant 0 : i32
    return %arg0, %c0_i32 : i32, i32
  }
}

</mosaic_0001>

<bundles_post_ra>
// kernel: tpu_custom_call.1
= control target key start
LH: loop header
LB: loop body
LE: loop exit
PB: predicated region body
PF: predicated region fallthrough
CT: control target
= control target key end

     0   :  { %vm25_vm0 = vcmask 261120   ;;  %s479_s0 = inlined_call_operand.vmem [shape: f32[16,32], index: 0, kind: input, shape index: {}]   ;;  %s480_s1 = inlined_call_operand.vmem [shape: f32[32,64], index: 1, kind: input, shape index: {}]   ;;  %s481_s2 = inlined_call_operand.vmem [shape: f32[1,64], index: 2, kind: input, shape index: {}]   ;;  %s482_s3 = inlined_call_operand.vmem [shape: f32[64,32], index: 3, kind: input, shape index: {}]   ;;  %s483_s4 = inlined_call_operand.vmem [shape: f32[1,32], index: 4, kind: input, shape index: {}]   ;;  %s484_s5 = inlined_call_operand.hbm [shape: f32[16,32], index: 5, kind: output, shape index: {}]  }
   0x1   :  { %v28_v0 = vld [vmem:[%s480_s1] sm:$0xff]  ;;  %v29_v1 = vld [vmem:[%s480_s1 + $0x8] sm:$0xff]  ;;  %v30_v2 = vld [vmem:[%s480_s1 + $0x10] sm:$0xff] }
   0x2   :  { %v321_v3 = vpack.c.bf16 %v29_v1, %v28_v0  ;;  %v31_v4 = vld [vmem:[%s480_s1 + $0x18] sm:$0xff]  ;;  %v41_v5 = vld [vmem:[%s479_s0] sm:$0xff] }
   0x3   :  { %v325_v6 = vpack.c.bf16 %v31_v4, %v30_v2  ;;  %299 = vmatprep.mubr.msk.f32.mxu0 %vm25_vm0, %v41_v5 }
   0x4   :  { %10 = vsyncpa [#allocation4], 0  ;;  %322 = vmatprep.subr.bf16.mxu0 %v321_v3  ;;  %v42_v7 = vld [vmem:[%s479_s0 + $0x8] sm:$0xff]  ;;  %v33_v8 = vld [vmem:[%s482_s3] sm:$0xff]  ;;  %v377_v20 = vmov 0.0   ;;  %vm151_vm1 = vcmask 523264  }
   0x5   :  { %324 = vmatpush3.bf16.msra.mxu0 %v321_v3  ;;  %v34_v9 = vld [vmem:[%s482_s3 + $0x8] sm:$0xff]  ;;  %v35_v11 = vld [vmem:[%s482_s3 + $0x10] sm:$0xff]  ;;  %v36_v12 = vld [vmem:[%s482_s3 + $0x18] sm:$0xff]  ;;  %27 = vst.msk [vmem:[#allocation2 + $0x8] sm:$0xff] %vm25_vm0, %v377_v20  ;;  %s378_s21 = smov [#allocation3]  }
   0x6   :  { %326 = vmatprep.subr.bf16.mxu0 %v325_v6  ;;  %v329_v10 = vpack.c.bf16 %v34_v9, %v33_v8  ;;  %v37_v13 = vld [vmem:[%s482_s3 + $0x20] sm:$0xff]  ;;  %v333_v14 = vpack.c.bf16 %v36_v12, %v35_v11  ;;  %v38_v15 = vld [vmem:[%s482_s3 + $0x28] sm:$0xff]  ;;  %v39_v17 = vld [vmem:[%s482_s3 + $0x30] sm:$0xff]  ;;  %26 = vst.msk [vmem:[#allocation2] sm:$0xff] %vm25_vm0, %v377_v20  ;;  %s258_s22 = sshll.u32 %s378_s21, 4  ;;  %s259_s22 = int_to_ptr.vmem [resolvable:$true] %s258_s22 }
   0x7   :  { %v337_v16 = vpack.c.bf16 %v38_v15, %v37_v13  ;;  %v40_v18 = vld [vmem:[%s482_s3 + $0x38] sm:$0xff]  ;;  %v269_v21 = vld [vmem:[%s481_s2] ss:$0 sm:$0xff]  ;;  %s353_s23 = scalar_lea.vmem %s259_s22, 256  ;;  %p358_p1 = scmp.lt.s32.totalorder %s259_s22, %s259_s22 }
   0x8   :  { %330 = vmatprep.subr.bf16.mxu1 %v329_v10  ;;  %v341_v19 = vpack.c.bf16 %v40_v18, %v39_v17  ;;  %v274_v50 = vld [vmem:[%s483_s4] ss:$0 sm:$0xff]  ;;  %p354_p0 = scmp.ne.s32.totalorder %s259_s22, %s353_s23  ;;  %p359_p2 = scmp.lt.s32.totalorder %s353_s23, %s353_s23 }
   0x9   :  { %328 = vmatpush3.bf16.msra.mxu0 %v325_v6  ;;  %332 = vmatpush3.bf16.msra.mxu1 %v329_v10 }
   0xa   :  { %334 = vmatprep.subr.bf16.mxu1 %v333_v14  ;;  %p360_p3 = por %p359_p2, %p358_p1 }
   0xc   :  { %300 = vmatmul.mubr.msk.f32.vlgmr.msra.gmra.mrb[0].mxu0 %vm25_vm0, %v42_v7  ;;  %v150_v44 = vld [vmem:[#allocation2 + $0x8] sm:$0xff]  ;;  %p361_p4 = pnand %p360_p3, %p354_p0 }
   0xd   :  { %336 = vmatpush3.bf16.msra.mxu1 %v333_v14  ;;  %v149_v45 = vld [vmem:[#allocation2] sm:$0xff] }
   0xe   :  { %338 = vmatprep.subr.bf16.mxu1 %v337_v16 }
  0x11   :  { %340 = vmatpush3.bf16.msra.mxu1 %v337_v16 }
  0x12   :  { %342 = vmatprep.subr.bf16.mxu1 %v341_v19 }
  0x15   :  { %344 = vmatpush3.bf16.msra.mxu1 %v341_v19 }
  0xdf   :  { %v301_v22 = vpop.f32.mrb[0].mxu0 }
  0xe0   :  { %v128_v23 = vadd.f32 %v301_v22, %v269_v21  ;;  %v122_v24 = vpop.f32.mrb[1].mxu0 }
  0xe1   :  { %v123_v25 = vadd.f32 %v269_v21, %v122_v24 }
  0xe2   :  { %v134_v26 = vmul.f32 %v128_v23, %v128_v23  ;;  %v132_v41 = vmul.f32 0.5, %v128_v23 }
  0xe3   :  { %v133_v27 = vmul.f32 %v123_v25, %v123_v25  ;;  %v131_v39 = vmul.f32 0.5, %v123_v25 }
  0xe4   :  { %v136_v28 = vmul.f32 %v134_v26, %v128_v23 }
  0xe5   :  { %v135_v29 = vmul.f32 %v133_v27, %v123_v25 }
  0xe6   :  { %v138_v30 = vmul.f32 0.044715, %v136_v28 }
  0xe7   :  { %v137_v31 = vmul.f32 0.044715, %v135_v29 }
  0xe8   :  { %v140_v32 = vadd.f32 %v138_v30, %v128_v23 }
  0xe9   :  { %v139_v33 = vadd.f32 %v137_v31, %v123_v25 }
  0xea   :  { %v142_v34 = vmul.f32 0.7978846, %v140_v32 }
  0xeb   :  { %v141_v35 = vmul.f32 0.7978846, %v139_v33 }
  0xec   :  { %349 = vtanh.f32 %v142_v34 }
  0xed   :  { %351 = vtanh.f32 %v141_v35 }
  0xf6   :  { %v350_v36 = vpop.eup %349 }
  0xf7   :  { %v352_v37 = vpop.eup %351  ;;  %v146_v38 = vadd.f32 1.0, %v350_v36 }
  0xf8   :  { %v145_v40 = vadd.f32 1.0, %v352_v37 }
  0xf9   :  { %v148_v43 = vmul.f32 %v146_v38, %v132_v41 }
  0xfa   :  { %v147_v42 = vmul.f32 %v145_v40, %v131_v39 }
  0xfc   :  { %318 = vmatprep.mubr.msk.f32.mxu1 %vm151_vm1, %v147_v42 }
  0xfd   :  { %319 = vmatmul.mubr.msk.f32.vlgmr.msra.gmra.mrb[0].mxu1 %vm151_vm1, %v148_v43 }
 0x1d0   :  { %v320_v46 = vpop.f32.mrb[0].mxu1 }
 0x1d1   :  { %v234_v47 = vadd.f32 %v320_v46, %v150_v44  ;;  %v224_v48 = vpop.f32.mrb[1].mxu1 }
 0x1d2   :  { %v233_v49 = vadd.f32 %v224_v48, %v149_v45 }
 0x1d3   :  { %236 = vst.msk [vmem:[#allocation2 + $0x8] sm:$0xff] %vm25_vm0, %v234_v47 }
 0x1d4   :  { %235 = vst.msk [vmem:[#allocation2] sm:$0xff] %vm25_vm0, %v233_v49 }
 0x1da   :  { %v241_v51 = vld [vmem:[#allocation2 + $0x8] sm:$0xff] }
 0x1db   :  { %v240_v52 = vld [vmem:[#allocation2] sm:$0xff]  ;;  %v250_v53 = vadd.f32 %v274_v50, %v241_v51 }
 0x1dc   :  { %v249_v54 = vadd.f32 %v274_v50, %v240_v52 }
 0x1dd   :  { %252 = vst.msk [vmem:[#allocation3 + $0x8] sm:$0xff] %vm25_vm0, %v250_v53 }
 0x1de   :  { %251 = vst.msk [vmem:[#allocation3] sm:$0xff] %vm25_vm0, %v249_v54 }
 0x1df   :  { %364 = shalt.err (!%p361_p4)
}
 0x1e0   :  { %s365_s25 = scalar_lea.hbm %s484_s5, 256 }
 0x1e1   :  { %p366_p5 = scmp.ne.s32.totalorder %s484_s5, %s365_s25  ;;  %p369_p6 = scmp.lt.u32.totalorder %s365_s25, %s484_s5 }
 0x1e3   :  { %p371_p7 = pnand %p369_p6, %p366_p5 }
 0x1e5   :  { %374 = shalt.err (!%p371_p7)
}
 0x1e6   :  { %s379_s30 = smov 128   ;;  %s380_s1 = smov 8  }
 0x1e7   :  { %264 = dma.vmem_to_hbm [thread:$0]  %s259_s22, 256, %s484_s5, [#allocation4], %s379_s30, %s379_s30, %s380_s1  }
 0x1e8   :  { %375 = dma.done.wait [#allocation4], 256  }
 0x1e9   :  { %376 = vsyncadd [#allocation4], 4294967040 }
 0x1ea   :  { %268 = vsyncpa [#allocation4], 1 }

</bundles_post_ra>
